<compile_context>
chip_gen: v5e
topology: v5e:2x2
jax: 0.10.0
libtpu: 0.0.40
codegen_flags: <defaults>
</compile_context>

<pallas_src>
import jax
import jax.numpy as jnp
from jax.experimental import pallas as pl
from jax.experimental.pallas import tpu as pltpu

# ---- Model dimensions (from the PyTorch spec; input_dim is a ctor arg) -------
input_dim = 32
hidden_dim = 20
latent_dim = 10


def _round_up(n, m):
    return ((n + m - 1) // m) * m


# ---- Padded (lane-dense) dimensions ------------------------------------------
IN_P = _round_up(input_dim, 128)      # 128
HID_P = _round_up(hidden_dim, 128)    # 128
LAT_P = _round_up(latent_dim, 128)    # 128
OUT_P = 2 * LAT_P                     # [mean | log_var], each 128-lane padded
SLAB_W = max(HID_P, OUT_P)            # 256 : lane width of the parameter slab
BROW = IN_P + 2 * HID_P               # 384 : first bias row in the slab
P_ROWS = BROW + 8                     # 392 : bias band padded to a full sublane group


def encoder_kernel(x_ref, p_ref, o_ref):
    """out = [mean | log_var] = tanh(tanh(x@W1+b1)@W2+b2) @ [Wm|Wv] + [bm|bv]."""
    # Static (8,128)-aligned views into the single resident parameter slab.
    w1 = p_ref[0:IN_P, 0:HID_P]                       # (IN_P,  HID_P)
    w2 = p_ref[IN_P:IN_P + HID_P, 0:HID_P]            # (HID_P, HID_P)
    w34 = p_ref[IN_P + HID_P:BROW, 0:OUT_P]           # (HID_P, OUT_P) == [W_mean | W_var]
    bias_blk = p_ref[BROW:P_ROWS, :]                  # (8, SLAB_W) aligned bias band
    b1 = bias_blk[0:1, 0:HID_P]
    b2 = bias_blk[1:2, 0:HID_P]
    b34 = bias_blk[2:3, 0:OUT_P]                      # (1, OUT_P) == [b_mean | b_var]

    x = x_ref[...]
    h = jnp.tanh(jnp.dot(x, w1, preferred_element_type=jnp.float32) + b1)
    h = jnp.tanh(jnp.dot(h, w2, preferred_element_type=jnp.float32) + b2)
    o_ref[...] = (
        jnp.dot(h, w34, preferred_element_type=jnp.float32) + b34
    ).astype(o_ref.dtype)


def pack_params(params):
    """Pack all Encoder parameters into one zero-padded (P_ROWS, SLAB_W) slab."""
    w1, b1, w2, b2, wm, bm, wv, bv = params
    slab = jnp.zeros((P_ROWS, SLAB_W), jnp.float32)
    slab = slab.at[0:input_dim, 0:hidden_dim].set(w1)
    slab = slab.at[IN_P:IN_P + hidden_dim, 0:hidden_dim].set(w2)
    r = IN_P + HID_P
    slab = slab.at[r:r + hidden_dim, 0:latent_dim].set(wm)
    slab = slab.at[r:r + hidden_dim, LAT_P:LAT_P + latent_dim].set(wv)
    slab = slab.at[BROW, 0:hidden_dim].set(b1)
    slab = slab.at[BROW + 1, 0:hidden_dim].set(b2)
    slab = slab.at[BROW + 2, 0:latent_dim].set(bm)
    slab = slab.at[BROW + 2, LAT_P:LAT_P + latent_dim].set(bv)
    return slab


@jax.jit
def encoder_forward(x, params):
    B = x.shape[0]
    # Batch tile: multiple of 8 sublanes; cap at 256 rows so VMEM stays tiny
    # even on v7x (64 MiB) while still amortizing the ~0.35us/step overhead.
    tile_b = min(256, _round_up(B, 8))
    b_pad = _round_up(B, tile_b)
    nb = b_pad // tile_b

    # Zero-pad batch to a tile multiple and features to 128 lanes.
    xp = jnp.zeros((b_pad, IN_P), jnp.float32).at[:B, :input_dim].set(
        x.astype(jnp.float32))
    slab = pack_params(params)

    out = pl.pallas_call(
        encoder_kernel,
        out_shape=jax.ShapeDtypeStruct((b_pad, OUT_P), jnp.float32),
        grid=(nb,),
        in_specs=[
            pl.BlockSpec((tile_b, IN_P), lambda i: (i, 0)),    # activations stream
            pl.BlockSpec((P_ROWS, SLAB_W), lambda i: (0, 0)),  # params stay resident
        ],
        out_specs=pl.BlockSpec((tile_b, OUT_P), lambda i: (i, 0)),
        compiler_params=pltpu.CompilerParams(
            dimension_semantics=("parallel",),                 # shard batch on v7x's 2 TCs
        ),
    )(xp, slab)

    mean = out[:B, :latent_dim]
    log_var = out[:B, LAT_P:LAT_P + latent_dim]
    return mean, log_var


def init_params(key):
    """Deterministic synthetic init; weights already in [in, out] layout."""
    ks = jax.random.split(key, 8)
    s = 0.1
    w1 = jax.random.normal(ks[0], (input_dim, hidden_dim), jnp.float32) * s
    b1 = jax.random.normal(ks[1], (hidden_dim,), jnp.float32) * s
    w2 = jax.random.normal(ks[2], (hidden_dim, hidden_dim), jnp.float32) * s
    b2 = jax.random.normal(ks[3], (hidden_dim,), jnp.float32) * s
    wm = jax.random.normal(ks[4], (hidden_dim, latent_dim), jnp.float32) * s
    bm = jax.random.normal(ks[5], (latent_dim,), jnp.float32) * s
    wv = jax.random.normal(ks[6], (hidden_dim, latent_dim), jnp.float32) * s
    bv = jax.random.normal(ks[7], (latent_dim,), jnp.float32) * s
    return (w1, b1, w2, b2, wm, bm, wv, bv)


def encoder_reference(x, params):
    w1, b1, w2, b2, wm, bm, wv, bv = params
    h = jnp.tanh(x @ w1 + b1)
    h = jnp.tanh(h @ w2 + b2)
    return h @ wm + bm, h @ wv + bv


if __name__ == "__main__":
    key = jax.random.PRNGKey(0)
    kx, kp = jax.random.split(key)
    batch = 8
    x = jax.random.normal(kx, (batch, input_dim), jnp.float32)
    params = init_params(kp)

    mean, log_var = jax.block_until_ready(encoder_forward(x, params))
    mean_ref, log_var_ref = encoder_reference(x, params)

    assert mean.shape == (batch, latent_dim)
    assert log_var.shape == (batch, latent_dim)
    assert jnp.allclose(mean, mean_ref, atol=1e-5, rtol=1e-5), "mean mismatch"
    assert jnp.allclose(log_var, log_var_ref, atol=1e-5, rtol=1e-5), "log_var mismatch"

    print("KERNEL_OK")
</pallas_src>

<mosaic_0001>
module attributes {stable_mosaic.version = 11 : i64} {
  func.func @encoder_kernel(%arg0: i32, %arg1: memref<8x128xf32, #tpu.memory_space<vmem>>, %arg2: memref<392x256xf32, #tpu.memory_space<vmem>>, %arg3: memref<8x256xf32, #tpu.memory_space<vmem>>) attributes {dimension_semantics = [#tpu.dimension_semantics<parallel>], iteration_bounds = array<i64: 1>, scalar_prefetch = 0 : i64, scratch_operands = 0 : i64, tpu.core_type = #tpu.core_type<tc>, window_params = [{transform_indices = @transform_0, window_bounds = array<i64: 8, 128>}, {pipeline_mode = #tpu.pipeline_mode<synchronous>, transform_indices = @transform_1, window_bounds = array<i64: 392, 256>}, {transform_indices = @transform_2, window_bounds = array<i64: 8, 256>}]} {
    %c0 = arith.constant 0 : index
    %c0_0 = arith.constant 0 : index
    %0 = vector.load %arg2[%c0, %c0_0] : memref<392x256xf32, #tpu.memory_space<vmem>>, vector<128x128xf32>
    %c128 = arith.constant 128 : index
    %c0_1 = arith.constant 0 : index
    %1 = vector.load %arg2[%c128, %c0_1] : memref<392x256xf32, #tpu.memory_space<vmem>>, vector<128x128xf32>
    %c256 = arith.constant 256 : index
    %c0_2 = arith.constant 0 : index
    %2 = vector.load %arg2[%c256, %c0_2] : memref<392x256xf32, #tpu.memory_space<vmem>>, vector<128x256xf32>
    %c384 = arith.constant 384 : index
    %c0_3 = arith.constant 0 : index
    %3 = vector.load %arg2[%c384, %c0_3] : memref<392x256xf32, #tpu.memory_space<vmem>>, vector<8x256xf32>
    %4 = vector.extract_strided_slice %3 {offsets = [0, 0], sizes = [1, 128], strides = [1, 1]} : vector<8x256xf32> to vector<1x128xf32>
    %5 = vector.extract_strided_slice %3 {offsets = [1, 0], sizes = [1, 128], strides = [1, 1]} : vector<8x256xf32> to vector<1x128xf32>
    %6 = vector.extract_strided_slice %3 {offsets = [2, 0], sizes = [1, 256], strides = [1, 1]} : vector<8x256xf32> to vector<1x256xf32>
    %c0_4 = arith.constant 0 : index
    %c0_5 = arith.constant 0 : index
    %7 = vector.load %arg1[%c0_4, %c0_5] : memref<8x128xf32, #tpu.memory_space<vmem>>, vector<8x128xf32>
    %cst = arith.constant dense<0.000000e+00> : vector<8x128xf32>
    %8 = tpu.matmul %7, %0, %cst {dimension_numbers = #tpu.dot_dimension_numbers<[1], [0], [0], [1], [0, 0, 1, 1], [], []>} : vector<8x128xf32>, vector<128x128xf32>, vector<8x128xf32> -> vector<8x128xf32>
    %9 = vector.broadcast %4 : vector<1x128xf32> to vector<8x128xf32>
    %10 = arith.addf %8, %9 : vector<8x128xf32>
    %11 = math.tanh %10 : vector<8x128xf32>
    %cst_6 = arith.constant dense<0.000000e+00> : vector<8x128xf32>
    %12 = tpu.matmul %11, %1, %cst_6 {dimension_numbers = #tpu.dot_dimension_numbers<[1], [0], [0], [1], [0, 0, 1, 1], [], []>} : vector<8x128xf32>, vector<128x128xf32>, vector<8x128xf32> -> vector<8x128xf32>
    %13 = vector.broadcast %5 : vector<1x128xf32> to vector<8x128xf32>
    %14 = arith.addf %12, %13 : vector<8x128xf32>
    %15 = math.tanh %14 : vector<8x128xf32>
    %cst_7 = arith.constant dense<0.000000e+00> : vector<8x256xf32>
    %16 = tpu.matmul %15, %2, %cst_7 {dimension_numbers = #tpu.dot_dimension_numbers<[1], [0], [0], [1], [0, 0, 1, 1], [], []>} : vector<8x128xf32>, vector<128x256xf32>, vector<8x256xf32> -> vector<8x256xf32>
    %17 = vector.broadcast %6 : vector<1x256xf32> to vector<8x256xf32>
    %18 = arith.addf %16, %17 : vector<8x256xf32>
    %c0_8 = arith.constant 0 : index
    %c0_9 = arith.constant 0 : index
    %19 = vector.load %arg3[%c0_8, %c0_9] : memref<8x256xf32, #tpu.memory_space<vmem>>, vector<8x256xf32>
    tpu.vector_store %arg3[%c0_8, %c0_9], %18 {strides = array<i32>} : memref<8x256xf32, #tpu.memory_space<vmem>>, vector<8x256xf32>,
    return
  }
  func.func @transform_0(%arg0: i32) -> (i32, i32) {
    %c0_i32 = arith.constant 0 : i32
    %c0_i32_0 = arith.constant 0 : i32
    return %arg0, %c0_i32 : i32, i32
  }
  func.func @transform_1(%arg0: i32) -> (i32, i32) {
    %c0_i32 = arith.constant 0 : i32
    %c0_i32_0 = arith.constant 0 : i32
    %c0_i32_1 = arith.constant 0 : i32
    return %c0_i32, %c0_i32_0 : i32, i32
  }
  func.func @transform_2(%arg0: i32) -> (i32, i32) {
    %c0_i32 = arith.constant 0 : i32
    %c0_i32_0 = arith.constant 0 : i32
    return %arg0, %c0_i32 : i32, i32
  }
}

</mosaic_0001>

<bundles_post_ra>
// kernel: encoder_forward.1
= control target key start
LH: loop header
LB: loop body
LE: loop exit
PB: predicated region body
PF: predicated region fallthrough
CT: control target
= control target key end

     0   :  { %s396_s1 = inlined_call_operand.vmem [shape: f32[392,256], index: 1, kind: input, shape index: {}]   ;;  %s397_s0 = inlined_call_operand.vmem [shape: f32[8,128], index: 0, kind: input, shape index: {}]   ;;  %s398_s2 = inlined_call_operand.vmem [shape: f32[8,256], index: 2, kind: output, shape index: {}]  }
   0x1   :  { %v26_v0 = vld [vmem:[%s396_s1 + $0xf0] sm:$0xff]  ;;  %v25_v1 = vld [vmem:[%s396_s1 + $0xe0] sm:$0xff]  ;;  %v74_v34 = vld [vmem:[%s396_s1 + $0x2f8] sm:$0xff] }
   0x2   :  { %79 = vmatpush.msra.mxu0 %v26_v0  ;;  %v24_v2 = vld [vmem:[%s396_s1 + $0xd0] sm:$0xff]  ;;  %v23_v3 = vld [vmem:[%s396_s1 + $0xc0] sm:$0xff]  ;;  %144 = vmatpush.msra.mxu3 %v74_v34  ;;  %v72_v36 = vld [vmem:[%s396_s1 + $0x2e8] sm:$0xff] }
   0x3   :  { %v42_v4 = vld [vmem:[%s396_s1 + $0x1f0] sm:$0xff]  ;;  %v41_v6 = vld [vmem:[%s396_s1 + $0x1e0] sm:$0xff]  ;;  %v70_v38 = vld [vmem:[%s396_s1 + $0x2d8] sm:$0xff] }
   0x4   :  { %80 = vmatpush.msra.mxu0 %v25_v1  ;;  %v22_v5 = vld [vmem:[%s396_s1 + $0xb0] sm:$0xff]  ;;  %101 = vmatpush.msra.mxu1 %v42_v4  ;;  %v21_v8 = vld [vmem:[%s396_s1 + $0xa0] sm:$0xff]  ;;  %v68_v40 = vld [vmem:[%s396_s1 + $0x2c8] sm:$0xff] }
   0x5   :  { %v40_v7 = vld [vmem:[%s396_s1 + $0x1d0] sm:$0xff]  ;;  %v39_v9 = vld [vmem:[%s396_s1 + $0x1c0] sm:$0xff]  ;;  %145 = vmatpush.msra.mxu3 %v72_v36  ;;  %v66_v42 = vld [vmem:[%s396_s1 + $0x2b8] sm:$0xff] }
   0x6   :  { %81 = vmatpush.msra.mxu0 %v24_v2  ;;  %102 = vmatpush.msra.mxu1 %v41_v6  ;;  %v20_v10 = vld [vmem:[%s396_s1 + $0x90] sm:$0xff]  ;;  %v19_v12 = vld [vmem:[%s396_s1 + $0x80] sm:$0xff]  ;;  %v64_v44 = vld [vmem:[%s396_s1 + $0x2a8] sm:$0xff] }
   0x7   :  { %v38_v11 = vld [vmem:[%s396_s1 + $0x1b0] sm:$0xff]  ;;  %v37_v13 = vld [vmem:[%s396_s1 + $0x1a0] sm:$0xff]  ;;  %146 = vmatpush.msra.mxu3 %v70_v38  ;;  %v62_v46 = vld [vmem:[%s396_s1 + $0x298] sm:$0xff] }
   0x8   :  { %82 = vmatpush.msra.mxu0 %v23_v3  ;;  %103 = vmatpush.msra.mxu1 %v40_v7  ;;  %v18_v14 = vld [vmem:[%s396_s1 + $0x70] sm:$0xff]  ;;  %v17_v16 = vld [vmem:[%s396_s1 + $0x60] sm:$0xff]  ;;  %v60_v48 = vld [vmem:[%s396_s1 + $0x288] sm:$0xff] }
   0x9   :  { %v36_v15 = vld [vmem:[%s396_s1 + $0x190] sm:$0xff]  ;;  %v35_v17 = vld [vmem:[%s396_s1 + $0x180] sm:$0xff]  ;;  %147 = vmatpush.msra.mxu3 %v68_v40  ;;  %v58_v50 = vld [vmem:[%s396_s1 + $0x278] sm:$0xff] }
   0xa   :  { %83 = vmatpush.msra.mxu0 %v22_v5  ;;  %104 = vmatpush.msra.mxu1 %v39_v9  ;;  %v16_v18 = vld [vmem:[%s396_s1 + $0x50] sm:$0xff]  ;;  %v15_v20 = vld [vmem:[%s396_s1 + $0x40] sm:$0xff]  ;;  %v56_v53 = vld [vmem:[%s396_s1 + $0x268] sm:$0xff] }
   0xb   :  { %v34_v19 = vld [vmem:[%s396_s1 + $0x170] sm:$0xff]  ;;  %v33_v21 = vld [vmem:[%s396_s1 + $0x160] sm:$0xff]  ;;  %148 = vmatpush.msra.mxu3 %v66_v42  ;;  %v54_v55 = vld [vmem:[%s396_s1 + $0x258] sm:$0xff] }
   0xc   :  { %84 = vmatpush.msra.mxu0 %v21_v8  ;;  %105 = vmatpush.msra.mxu1 %v38_v11  ;;  %v14_v22 = vld [vmem:[%s396_s1 + $0x30] sm:$0xff]  ;;  %v13_v24 = vld [vmem:[%s396_s1 + $0x20] sm:$0xff]  ;;  %v52_v61 = vld [vmem:[%s396_s1 + $0x248] sm:$0xff] }
   0xd   :  { %v32_v23 = vld [vmem:[%s396_s1 + $0x150] sm:$0xff]  ;;  %v11_v26 = vld [vmem:[%s396_s1] sm:$0xff]  ;;  %149 = vmatpush.msra.mxu3 %v64_v44  ;;  %v50_v63 = vld [vmem:[%s396_s1 + $0x238] sm:$0xff] }
   0xe   :  { %85 = vmatpush.msra.mxu0 %v20_v10  ;;  %106 = vmatpush.msra.mxu1 %v37_v13  ;;  %v12_v25 = vld [vmem:[%s396_s1 + $0x10] sm:$0xff]  ;;  %v77_v27 = vld [vmem:[%s397_s0] sm:$0xff]  ;;  %v48_v1 = vld [vmem:[%s396_s1 + $0x228] sm:$0xff] }
   0xf   :  { %v31_v28 = vld [vmem:[%s396_s1 + $0x140] sm:$0xff]  ;;  %v30_v29 = vld [vmem:[%s396_s1 + $0x130] sm:$0xff]  ;;  %150 = vmatpush.msra.mxu3 %v62_v46  ;;  %v46_v3 = vld [vmem:[%s396_s1 + $0x218] sm:$0xff] }
  0x10   :  { %86 = vmatpush.msra.mxu0 %v19_v12  ;;  %107 = vmatpush.msra.mxu1 %v36_v15  ;;  %v29_v30 = vld [vmem:[%s396_s1 + $0x120] sm:$0xff]  ;;  %v28_v31 = vld [vmem:[%s396_s1 + $0x110] sm:$0xff]  ;;  %v44_v5 = vld [vmem:[%s396_s1 + $0x208] sm:$0xff] }
  0x11   :  { %v27_v32 = vld [vmem:[%s396_s1 + $0x100] sm:$0xff]  ;;  %v73_v33 = vld [vmem:[%s396_s1 + $0x2f0] sm:$0xff]  ;;  %151 = vmatpush.msra.mxu3 %v60_v48  ;;  %v76_v10 = vld [vmem:[%s396_s1 + $0x308] sm:$0xff] }
  0x12   :  { %87 = vmatpush.msra.mxu0 %v18_v14  ;;  %108 = vmatpush.msra.mxu1 %v35_v17  ;;  %v71_v35 = vld [vmem:[%s396_s1 + $0x2e0] sm:$0xff]  ;;  %v69_v37 = vld [vmem:[%s396_s1 + $0x2d0] sm:$0xff]  ;;  %v123_v12 = vperm.slane %v76_v10, 2 }
  0x13   :  { %124 = vmatpush.msra.mxu2 %v73_v33  ;;  %v67_v39 = vld [vmem:[%s396_s1 + $0x2c0] sm:$0xff]  ;;  %v65_v41 = vld [vmem:[%s396_s1 + $0x2b0] sm:$0xff]  ;;  %152 = vmatpush.msra.mxu3 %v58_v50 }
  0x14   :  { %88 = vmatpush.msra.mxu0 %v17_v16  ;;  %109 = vmatpush.msra.mxu1 %v34_v19  ;;  %v63_v43 = vld [vmem:[%s396_s1 + $0x2a0] sm:$0xff]  ;;  %v61_v45 = vld [vmem:[%s396_s1 + $0x290] sm:$0xff] }
  0x15   :  { %125 = vmatpush.msra.mxu2 %v71_v35  ;;  %v59_v47 = vld [vmem:[%s396_s1 + $0x280] sm:$0xff]  ;;  %v57_v49 = vld [vmem:[%s396_s1 + $0x270] sm:$0xff]  ;;  %153 = vmatpush.msra.mxu3 %v56_v53 }
  0x16   :  { %89 = vmatpush.msra.mxu0 %v16_v18  ;;  %110 = vmatpush.msra.mxu1 %v33_v21  ;;  %v75_v51 = vld [vmem:[%s396_s1 + $0x300] sm:$0xff]  ;;  %v53_v54 = vld [vmem:[%s396_s1 + $0x250] sm:$0xff] }
  0x17   :  { %126 = vmatpush.msra.mxu2 %v69_v37  ;;  %v55_v52 = vld [vmem:[%s396_s1 + $0x260] sm:$0xff]  ;;  %v78_v56 = vperm.slane %v75_v51, 0  ;;  %154 = vmatpush.msra.mxu3 %v54_v55  ;;  %v49_v62 = vld [vmem:[%s396_s1 + $0x230] sm:$0xff]  ;;  %v100_v6 = vperm.slane %v75_v51, 1  ;;  %v122_v11 = vperm.slane %v75_v51, 2 }
  0x18   :  { %90 = vmatpush.msra.mxu0 %v15_v20  ;;  %111 = vmatpush.msra.mxu1 %v32_v23  ;;  %v51_v60 = vld [vmem:[%s396_s1 + $0x240] sm:$0xff]  ;;  %v45_v2 = vld [vmem:[%s396_s1 + $0x210] sm:$0xff] }
  0x19   :  { %127 = vmatpush.msra.mxu2 %v67_v39  ;;  %155 = vmatpush.msra.mxu3 %v52_v61  ;;  %v47_v0 = vld [vmem:[%s396_s1 + $0x220] sm:$0xff] }
  0x1a   :  { %91 = vmatpush.msra.mxu0 %v14_v22  ;;  %112 = vmatpush.msra.mxu1 %v31_v28  ;;  %v43_v4 = vld [vmem:[%s396_s1 + $0x200] sm:$0xff] }
  0x1b   :  { %128 = vmatpush.msra.mxu2 %v65_v41  ;;  %156 = vmatpush.msra.mxu3 %v50_v63 }
  0x1c   :  { %92 = vmatpush.msra.mxu0 %v13_v24  ;;  %113 = vmatpush.msra.mxu1 %v30_v29 }
  0x1d   :  { %129 = vmatpush.msra.mxu2 %v63_v43  ;;  %157 = vmatpush.msra.mxu3 %v48_v1 }
  0x1e   :  { %93 = vmatpush.msra.mxu0 %v12_v25  ;;  %114 = vmatpush.msra.mxu1 %v29_v30 }
  0x1f   :  { %130 = vmatpush.msra.mxu2 %v61_v45  ;;  %158 = vmatpush.msra.mxu3 %v46_v3 }
  0x20   :  { %94 = vmatpush.msra.mxu0 %v11_v26  ;;  %115 = vmatpush.msra.mxu1 %v28_v31 }
  0x21   :  { %95 = vmatmul.f32.vlgmr.msra.gmra.mxu0 %v77_v27  ;;  %131 = vmatpush.msra.mxu2 %v59_v47 }
  0x22   :  { %116 = vmatpush.msra.mxu1 %v27_v32  ;;  %159 = vmatpush.msra.mxu3 %v44_v5 }
  0x23   :  { %132 = vmatpush.msra.mxu2 %v57_v49 }
  0x25   :  { %133 = vmatpush.msra.mxu2 %v55_v52 }
  0x27   :  { %134 = vmatpush.msra.mxu2 %v53_v54 }
  0x29   :  { %135 = vmatpush.msra.mxu2 %v51_v60 }
  0x2b   :  { %136 = vmatpush.msra.mxu2 %v49_v62 }
  0x2d   :  { %137 = vmatpush.msra.mxu2 %v47_v0 }
  0x2f   :  { %138 = vmatpush.msra.mxu2 %v45_v2 }
  0x31   :  { %139 = vmatpush.msra.mxu2 %v43_v4 }
  0x9e   :  { %v96_v57 = vpop.f32.mrf.mxu0 }
  0x9f   :  { %v97_v58 = vadd.f32 %v96_v57, %v78_v56 }
  0xa1   :  { %170 = vtanh.f32 %v97_v58 }
  0xa7   :  { %v171_v59 = vpop.eup %170 }
  0xa8   :  { %117 = vmatmul.f32.vlgmr.msra.gmra.mxu1 %v171_v59 }
 0x125   :  { %v118_v7 = vpop.f32.mrf.mxu1 }
 0x126   :  { %v119_v8 = vadd.f32 %v118_v7, %v100_v6 }
 0x128   :  { %172 = vtanh.f32 %v119_v8 }
 0x12e   :  { %v173_v9 = vpop.eup %172 }
 0x12f   :  { %140 = vmatmul.f32.vlgmr.msra.gmra.mxu2 %v173_v9  ;;  %160 = vmatmul.f32.vlgmr.msra.gmra.mxu3 %v173_v9 }
 0x1b2   :  { %v141_v13 = vpop.f32.mrf.mxu2  ;;  %v161_v14 = vpop.f32.mrf.mxu3 }
 0x1b3   :  { %v142_v15 = vadd.f32 %v141_v13, %v122_v11  ;;  %v162_v16 = vadd.f32 %v161_v14, %v123_v12 }
 0x1b5   :  { %164 = vst [vmem:[%s398_s2] sm:$0xff] %v142_v15 }
 0x1b6   :  { %165 = vst [vmem:[%s398_s2 + $0x8] sm:$0xff] %v162_v16 }

</bundles_post_ra>
